<compile_context>
chip_gen: v7x
topology: tpu7x:2x2x1
jax: 0.10.0
libtpu: 0.0.40
codegen_flags: <defaults>
</compile_context>

<pallas_src>
import jax
import jax.numpy as jnp
from jax.experimental import pallas as pl
from jax.experimental.pallas import tpu as pltpu

_LANE = 128


def _round_up(v, m=_LANE):
    return ((v + m - 1) // m) * m


def _ens_kernel(x_ref, w1_ref, b1_ref, coef_ref, w2_ref, b2_ref, slab_ref):
    """Single-step fused ensemble forward.

    x_ref    : (B, D)        flattened input (shared by all members)
    w1_ref   : (D, Hpad)     all members' first-layer weights, lane-concatenated
    b1_ref   : (1, Hpad)     matching first-layer biases
    coef_ref : (1, Hpad)     per-column ensemble coefficient  c_i / sum(weights)
    w2_ref   : (Hpad, Opad)  [stacked W2 | feature-sum selector | zero padding]
    b2_ref   : (1, Opad)     combined (already weighted & normalized) output bias
    slab_ref : (B, Opad)     packed result: [:, :K] output, [:, K:K+HF] feature
    """
    # Fused first layer for every member at once: (B, D) @ (D, Hpad).
    h = jnp.dot(x_ref[...], w1_ref[...], preferred_element_type=jnp.float32)
    h = jnp.maximum(h + b1_ref[...], 0.0)            # relu; padded lanes stay 0

    # Fold weighted-sum + 1/sum(weights) into a per-lane scale.
    h = h * coef_ref[...]

    # Fused second layer + feature combination: (B, Hpad) @ (Hpad, Opad).
    y = jnp.dot(h, w2_ref[...], preferred_element_type=jnp.float32) + b2_ref[...]
    slab_ref[...] = y.astype(slab_ref.dtype)


def ens_model_forward(x_nchw, params, weight_list):
    """x_nchw: (B, C, H, W) float32. params: dict of stacked member weights."""
    B = x_nchw.shape[0]
    x2d = x_nchw.reshape(B, -1)                       # matches torch .view(B, -1)
    D = x2d.shape[1]

    W1, b1, W2, b2 = params["W1"], params["b1"], params["W2"], params["b2"]
    N, _, HF = W1.shape
    K = W2.shape[2]

    NH = N * HF
    HID_PAD = _round_up(NH)                           # lane-dense hidden width
    OUT_PAD = _round_up(K + HF)                       # lane-dense output slab width

    # Ensemble coefficients. PyTorch quirk: member 0 is NOT scaled by
    # weight_list[0]; everything is divided by sum(weight_list) at the end.
    s = float(sum(weight_list))
    c = jnp.asarray([1.0] + [float(w) for w in weight_list[1:]],
                    jnp.float32) / s                  # (N,)

    # --- fused first layer: member i occupies columns [i*HF, (i+1)*HF) ---
    w1cat = jnp.transpose(W1, (1, 0, 2)).reshape(D, NH)
    w1p = jnp.zeros((D, HID_PAD), jnp.float32).at[:, :NH].set(w1cat)
    b1p = jnp.zeros((1, HID_PAD), jnp.float32).at[0, :NH].set(b1.reshape(NH))
    coefp = jnp.zeros((1, HID_PAD), jnp.float32).at[0, :NH].set(
        jnp.repeat(c, HF))

    # --- fused second layer + feature-sum selector ---
    # columns [0, K)      : stacked W2_i  -> weighted ensemble output (pre-bias)
    # columns [K, K + HF) : tiled identity -> weighted ensemble feature
    w2stack = W2.reshape(NH, K)
    sel = jnp.tile(jnp.eye(HF, dtype=jnp.float32), (N, 1))       # (NH, HF)
    w2p = jnp.zeros((HID_PAD, OUT_PAD), jnp.float32)
    w2p = w2p.at[:NH, :K].set(w2stack)
    w2p = w2p.at[:NH, K:K + HF].set(sel)

    # combined second-layer bias, already weighted and normalized
    b2cat = (c[:, None] * b2.reshape(N, K)).sum(axis=0)          # (K,)
    b2p = jnp.zeros((1, OUT_PAD), jnp.float32).at[0, :K].set(b2cat)

    vmem_spec = pl.BlockSpec(memory_space=pltpu.MemorySpace.VMEM)
    slab = pl.pallas_call(
        _ens_kernel,
        out_shape=jax.ShapeDtypeStruct((B, OUT_PAD), jnp.float32),
        in_specs=[vmem_spec] * 6,
        out_specs=vmem_spec,
    )(x2d, w1p, b1p, coefp, w2p, b2p)

    output = slab[:, :K]
    feature = slab[:, K:K + HF]
    return output, feature


def reference_forward(x_nchw, params, weight_list):
    """Pure-JAX re-implementation of EnsModel.forward for verification."""
    B = x_nchw.shape[0]
    x2d = x_nchw.reshape(B, -1)
    W1, b1, W2, b2 = params["W1"], params["b1"], params["W2"], params["b2"]
    N = W1.shape[0]
    output = None
    feature = None
    for i in range(N):
        f = jnp.maximum(x2d @ W1[i] + b1[i, 0], 0.0)
        o = f @ W2[i] + b2[i, 0]
        if i == 0:
            output, feature = o, f          # unscaled, per the PyTorch quirk
        else:
            output = output + o * weight_list[i]
            feature = feature + f * weight_list[i]
    s = float(sum(weight_list))
    return output / s, feature / s


def make_params(key, n_members, d_in, hf, k_out):
    keys = jax.random.split(key, 4)
    W1 = jax.random.normal(keys[0], (n_members, d_in, hf), jnp.float32) * 0.02
    b1 = jax.random.normal(keys[1], (n_members, 1, hf), jnp.float32) * 0.01
    W2 = jax.random.normal(keys[2], (n_members, hf, k_out), jnp.float32) * 0.05
    b2 = jax.random.normal(keys[3], (n_members, 1, k_out), jnp.float32) * 0.01
    return {"W1": W1, "b1": b1, "W2": W2, "b2": b2}


if __name__ == "__main__":
    # Small shapes consistent with the module's generic forward.
    B, C, H, W = 2, 4, 16, 16
    N_MEMBERS = 3
    HF = 32          # feature width of each member
    K = 8            # number of classes
    WEIGHT_LIST = [1.0, 2.0, 0.5]

    key = jax.random.PRNGKey(0)
    kx, kp = jax.random.split(key)
    x = jax.random.normal(kx, (B, C, H, W), jnp.float32)
    params = make_params(kp, N_MEMBERS, C * H * W, HF, K)

    out, feat = ens_model_forward(x, params, WEIGHT_LIST)
    out = jax.block_until_ready(out)
    feat = jax.block_until_ready(feat)

    ref_out, ref_feat = reference_forward(x, params, WEIGHT_LIST)
    assert jnp.allclose(out, ref_out, atol=1e-4, rtol=1e-4), "output mismatch"
    assert jnp.allclose(feat, ref_feat, atol=1e-4, rtol=1e-4), "feature mismatch"

    print("KERNEL_OK")
</pallas_src>

<mosaic_0001>
module attributes {stable_mosaic.version = 11 : i64} {
  func.func @_ens_kernel(%arg0: memref<2x1024xf32, #tpu.memory_space<vmem>>, %arg1: memref<1024x128xf32, #tpu.memory_space<vmem>>, %arg2: memref<1x128xf32, #tpu.memory_space<vmem>>, %arg3: memref<1x128xf32, #tpu.memory_space<vmem>>, %arg4: memref<128x128xf32, #tpu.memory_space<vmem>>, %arg5: memref<1x128xf32, #tpu.memory_space<vmem>>, %arg6: memref<2x128xf32, #tpu.memory_space<vmem>>) attributes {dimension_semantics = [], scalar_prefetch = 0 : i64, scratch_operands = 0 : i64, tpu.core_type = #tpu.core_type<tc>} {
    %c0 = arith.constant 0 : index
    %c0_0 = arith.constant 0 : index
    %0 = vector.load %arg0[%c0, %c0_0] : memref<2x1024xf32, #tpu.memory_space<vmem>>, vector<2x1024xf32>
    %c0_1 = arith.constant 0 : index
    %c0_2 = arith.constant 0 : index
    %1 = vector.load %arg1[%c0_1, %c0_2] : memref<1024x128xf32, #tpu.memory_space<vmem>>, vector<1024x128xf32>
    %cst = arith.constant dense<0.000000e+00> : vector<2x128xf32>
    %2 = tpu.matmul %0, %1, %cst {dimension_numbers = #tpu.dot_dimension_numbers<[1], [0], [0], [1], [0, 0, 1, 1], [], []>} : vector<2x1024xf32>, vector<1024x128xf32>, vector<2x128xf32> -> vector<2x128xf32>
    %c0_3 = arith.constant 0 : index
    %c0_4 = arith.constant 0 : index
    %3 = vector.load %arg2[%c0_3, %c0_4] : memref<1x128xf32, #tpu.memory_space<vmem>>, vector<1x128xf32>
    %4 = vector.broadcast %3 : vector<1x128xf32> to vector<2x128xf32>
    %5 = arith.addf %2, %4 : vector<2x128xf32>
    %cst_5 = arith.constant 0.000000e+00 : f32
    %6 = vector.broadcast %cst_5 : f32 to vector<2x128xf32>
    %7 = arith.maximumf %5, %6 : vector<2x128xf32>
    %c0_6 = arith.constant 0 : index
    %c0_7 = arith.constant 0 : index
    %8 = vector.load %arg3[%c0_6, %c0_7] : memref<1x128xf32, #tpu.memory_space<vmem>>, vector<1x128xf32>
    %9 = vector.broadcast %8 : vector<1x128xf32> to vector<2x128xf32>
    %10 = arith.mulf %7, %9 : vector<2x128xf32>
    %c0_8 = arith.constant 0 : index
    %c0_9 = arith.constant 0 : index
    %11 = vector.load %arg4[%c0_8, %c0_9] : memref<128x128xf32, #tpu.memory_space<vmem>>, vector<128x128xf32>
    %cst_10 = arith.constant dense<0.000000e+00> : vector<2x128xf32>
    %12 = tpu.matmul %10, %11, %cst_10 {dimension_numbers = #tpu.dot_dimension_numbers<[1], [0], [0], [1], [0, 0, 1, 1], [], []>} : vector<2x128xf32>, vector<128x128xf32>, vector<2x128xf32> -> vector<2x128xf32>
    %c0_11 = arith.constant 0 : index
    %c0_12 = arith.constant 0 : index
    %13 = vector.load %arg5[%c0_11, %c0_12] : memref<1x128xf32, #tpu.memory_space<vmem>>, vector<1x128xf32>
    %14 = vector.broadcast %13 : vector<1x128xf32> to vector<2x128xf32>
    %15 = arith.addf %12, %14 : vector<2x128xf32>
    %c0_13 = arith.constant 0 : index
    %c0_14 = arith.constant 0 : index
    %16 = vector.load %arg6[%c0_13, %c0_14] : memref<2x128xf32, #tpu.memory_space<vmem>>, vector<2x128xf32>
    tpu.vector_store %arg6[%c0_13, %c0_14], %15 {strides = array<i32>} : memref<2x128xf32, #tpu.memory_space<vmem>>, vector<2x128xf32>,
    return
  }
}

</mosaic_0001>

<bundles_post_ra>
// kernel: tpu_custom_call.1
= control target key start
LH: loop header
LB: loop body
LE: loop exit
PB: predicated region body
PF: predicated region fallthrough
CT: control target
= control target key end

     0   :  { %11 = vsyncpa [#allocation3], 0  ;;  %s1215_s0 = inlined_call_operand.hbm [shape: f32[2,1024], index: 0, kind: input, shape index: {}]   ;;  %s1216_s1 = inlined_call_operand.hbm [shape: f32[1024,128], index: 1, kind: input, shape index: {}]   ;;  %s1217_s2 = inlined_call_operand.vmem [shape: f32[1,128], index: 2, kind: input, shape index: {}]   ;;  %s1218_s3 = inlined_call_operand.vmem [shape: f32[1,128], index: 3, kind: input, shape index: {}]   ;;  %s1219_s4 = inlined_call_operand.hbm [shape: f32[128,128], index: 4, kind: input, shape index: {}]   ;;  %s1220_s5 = inlined_call_operand.vmem [shape: f32[1,128], index: 5, kind: input, shape index: {}]   ;;  %s1221_s6 = inlined_call_operand.hbm [shape: f32[2,128], index: 6, kind: output, shape index: {}]  }
   0x1   :  { %12 = vsyncpa [#allocation6], 0 }
   0x2   :  { %13 = vsyncpa [#allocation4], 0  ;;  %s1096_s21 = smov [#allocation5]   ;;  %s1002_s25 = scalar_lea.hbm %s1216_s1, 16384 }
   0x3   :  { %s29_s22 = sshll.u32 %s1096_s21, 4  ;;  %p1003_p0 = scmp.ne.s32.totalorder %s1216_s1, %s1002_s25  ;;  %s30_s22 = int_to_ptr.vmem [resolvable:$true] %s29_s22 }
   0x4   :  { %p1006_p1 = scmp.lt.u32.totalorder %s1002_s25, %s1216_s1 }
   0x6   :  { %p1008_p2 = pnand %p1006_p1, %p1003_p0 }
   0x8   :  { %1011 = shalt.err (!%p1008_p2)
}
   0x9   :  { %s1012_s30 = scalar_lea.vmem %s30_s22, 16384  ;;  %p1017_p4 = scmp.lt.s32.totalorder %s30_s22, %s30_s22 }
   0xa   :  { %p1013_p3 = scmp.ne.s32.totalorder %s30_s22, %s1012_s30  ;;  %p1018_p5 = scmp.lt.s32.totalorder %s1012_s30, %s1012_s30 }
   0xc   :  { %p1019_p6 = por %p1018_p5, %p1017_p4 }
   0xe   :  { %p1020_p7 = pnand %p1019_p6, %p1013_p3 }
  0x10   :  { %1023 = shalt.err (!%p1020_p7)
}
  0x11   :  { %s1097_s7 = smov 128   ;;  %s1098_s8 = smov 8  }
  0x12   :  { %35 = dma.hbm_to_vmem [thread:$0]  %s1216_s1, 16384, %s30_s22, [#allocation6], %s1097_s7, %s1097_s7, %s1098_s8  }
  0x13   :  { %s1099_s11 = smov [#allocation2]   ;;  %s1100_s13 = smov [#allocation7]  }
  0x14   :  { %s20_s12 = sshll.u32 %s1099_s11, 4  ;;  %s45_s14 = sshll.u32 %s1100_s13, 4  ;;  %s21_s12 = int_to_ptr.vmem [resolvable:$true] %s20_s12  ;;  %s46_s14 = int_to_ptr.vmem [resolvable:$true] %s45_s14 }
  0x15   :  { %s1024_s17 = scalar_lea.hbm %s1215_s0, 256 }
  0x16   :  { %p1025_p8 = scmp.ne.s32.totalorder %s1215_s0, %s1024_s17  ;;  %p1028_p9 = scmp.lt.u32.totalorder %s1024_s17, %s1215_s0 }
  0x18   :  { %p1030_p10 = pnand %p1028_p9, %p1025_p8 }
  0x1a   :  { %1033 = shalt.err (!%p1030_p10)
}
  0x1b   :  { %s1034_s1 = scalar_lea.vmem %s21_s12, 256  ;;  %p1039_p12 = scmp.lt.s32.totalorder %s21_s12, %s21_s12 }
  0x1c   :  { %p1035_p11 = scmp.ne.s32.totalorder %s21_s12, %s1034_s1  ;;  %p1040_p13 = scmp.lt.s32.totalorder %s1034_s1, %s1034_s1 }
  0x1e   :  { %p1041_p0 = por %p1040_p13, %p1039_p12 }
  0x20   :  { %p1042_p1 = pnand %p1041_p0, %p1035_p11 }
  0x22   :  { %1045 = shalt.err (!%p1042_p1)
}
  0x23   :  { %23 = dma.hbm_to_vmem [thread:$0]  %s1215_s0, 256, %s21_s12, [#allocation3]  }
  0x24   :  { %s1046_s26 = scalar_lea.hbm %s1219_s4, 2048 }
  0x25   :  { %p1047_p2 = scmp.ne.s32.totalorder %s1219_s4, %s1046_s26  ;;  %p1050_p3 = scmp.lt.u32.totalorder %s1046_s26, %s1219_s4 }
  0x27   :  { %p1052_p4 = pnand %p1050_p3, %p1047_p2 }
  0x29   :  { %1055 = shalt.err (!%p1052_p4)
}
  0x2a   :  { %s1056_s9 = scalar_lea.vmem %s46_s14, 2048  ;;  %p1061_p6 = scmp.lt.s32.totalorder %s46_s14, %s46_s14 }
  0x2b   :  { %p1057_p5 = scmp.ne.s32.totalorder %s46_s14, %s1056_s9  ;;  %p1062_p7 = scmp.lt.s32.totalorder %s1056_s9, %s1056_s9 }
  0x2d   :  { %p1063_p8 = por %p1062_p7, %p1061_p6 }
  0x2f   :  { %p1064_p9 = pnand %p1063_p8, %p1057_p5 }
  0x31   :  { %1067 = shalt.err (!%p1064_p9)
}
  0x32   :  { %51 = dma.hbm_to_vmem [thread:$0]  %s1219_s4, 2048, %s46_s14, [#allocation6], %s1097_s7, %s1097_s7, %s1098_s8  }
  0x33   :  { %1090 = dma.done.wait [#allocation3], 256  }
  0x34   :  { %1091 = vsyncadd [#allocation3], 4294967040 }
  0x35   :  { %1092 = dma.done.wait [#allocation6], 18432  }
  0x36   :  { %1093 = vsyncadd [#allocation6], 4294948864  ;;  %v81_v0 = vld [vmem:[#allocation5 + $0x80] sm:$0xff]  ;;  %v82_v1 = vld [vmem:[#allocation5 + $0x88] sm:$0xff]  ;;  %v1101_v47 = vmov 1983009808   ;;  %v206_v49 = vlaneseq }
  0x37   :  { %v65_v2 = vld [vmem:[#allocation5] sm:$0xff]  ;;  %v838_v3 = vpack.c.bf16 %v82_v1, %v81_v0  ;;  %v66_v4 = vld [vmem:[#allocation5 + $0x8] sm:$0xff]  ;;  %v83_v11 = vld [vmem:[#allocation5 + $0x90] sm:$0xff]  ;;  %v204_v48 = vunpack.c.l.s4 %v1101_v47  ;;  %vm1103_vm0 = vmmov 0   ;;  %s1105_s13 = smov [#allocation8]  }
  0x38   :  { %v113_v5 = vld [vmem:[#allocation5 + $0x180] sm:$0xff]  ;;  %v114_v6 = vld [vmem:[#allocation5 + $0x188] sm:$0xff]  ;;  %v840_v7 = vpack.c.bf16 %v66_v4, %v65_v2  ;;  %v84_v13 = vld [vmem:[#allocation5 + $0x98] sm:$0xff]  ;;  %v207_v0 = vshrl.u32 %v206_v49, 7  ;;  %s633_s14 = sshll.u32 %s1105_s13, 4  ;;  %s634_s14 = int_to_ptr.vmem [resolvable:$true] %s633_s14 }
  0x39   :  { %v870_v8 = vpack.c.bf16 %v114_v6, %v113_v5  ;;  %v97_v9 = vld [vmem:[#allocation5 + $0x100] sm:$0xff]  ;;  %v98_v10 = vld [vmem:[#allocation5 + $0x108] sm:$0xff]  ;;  %839 = vmatprep.subr.bf16.mxu0 %v838_v3  ;;  %v67_v14 = vld [vmem:[#allocation5 + $0x10] sm:$0xff]  ;;  %v842_v16 = vpack.c.bf16 %v84_v13, %v83_v11  ;;  %v205_v63 = vunpack.c.0.s8 %v204_v48  ;;  %s1068_s15 = scalar_lea.vmem %s634_s14, 32  ;;  %p1073_p11 = scmp.lt.s32.totalorder %s634_s14, %s634_s14 }
  0x3a   :  { %v872_v12 = vpack.c.bf16 %v98_v10, %v97_v9  ;;  %v68_v15 = vld [vmem:[#allocation5 + $0x18] sm:$0xff]  ;;  %841 = vmatpush3.bf16.msra.mxu0 %v840_v7  ;;  %v115_v18 = vld [vmem:[#allocation5 + $0x190] sm:$0xff]  ;;  %v85_v23 = vld [vmem:[#allocation5 + $0xa0] sm:$0xff]  ;;  %p1069_p10 = scmp.ne.s32.totalorder %s634_s14, %s1068_s15  ;;  %p1074_p12 = scmp.lt.s32.totalorder %s1068_s15, %s1068_s15 }
  0x3b   :  { %871 = vmatprep.subr.bf16.mxu1 %v870_v8  ;;  %v844_v17 = vpack.c.bf16 %v68_v15, %v67_v14  ;;  %v116_v19 = vld [vmem:[#allocation5 + $0x198] sm:$0xff]  ;;  %v99_v20 = vld [vmem:[#allocation5 + $0x110] sm:$0xff]  ;;  %v86_v24 = vld [vmem:[#allocation5 + $0xa8] sm:$0xff]  ;;  %843 = vmatprep.subr.bf16.mxu0 %v842_v16  ;;  %v1183_v13 = vsub.s32 %v205_v63, %v207_v0 }
  0x3c   :  { %873 = vmatpush3.bf16.msra.mxu1 %v872_v12  ;;  %v874_v21 = vpack.c.bf16 %v116_v19, %v115_v18  ;;  %v100_v22 = vld [vmem:[#allocation5 + $0x118] sm:$0xff]  ;;  %v846_v26 = vpack.c.bf16 %v86_v24, %v85_v23  ;;  %v69_v27 = vld [vmem:[#allocation5 + $0x20] sm:$0xff]  ;;  %v70_v28 = vld [vmem:[#allocation5 + $0x28] sm:$0xff]  ;;  %p1075_p13 = por %p1074_p12, %p1073_p11 }
  0x3d   :  { %v876_v25 = vpack.c.bf16 %v100_v22, %v99_v20  ;;  %v117_v29 = vld [vmem:[#allocation5 + $0x1a0] sm:$0xff]  ;;  %v118_v30 = vld [vmem:[#allocation5 + $0x1a8] sm:$0xff]  ;;  %v848_v33 = vpack.c.bf16 %v70_v28, %v69_v27  ;;  %v87_v35 = vld [vmem:[#allocation5 + $0xb0] sm:$0xff] }
  0x3e   :  { %875 = vmatprep.subr.bf16.mxu1 %v874_v21  ;;  %v101_v31 = vld [vmem:[#allocation5 + $0x120] sm:$0xff]  ;;  %v102_v32 = vld [vmem:[#allocation5 + $0x128] sm:$0xff]  ;;  %845 = vmatpush3.bf16.msra.mxu0 %v844_v17  ;;  %v878_v34 = vpack.c.bf16 %v118_v30, %v117_v29  ;;  %v88_v36 = vld [vmem:[#allocation5 + $0xb8] sm:$0xff]  ;;  %p1076_p0 = pnand %p1075_p13, %p1069_p10 }
  0x3f   :  { %v71_v37 = vld [vmem:[#allocation5 + $0x30] sm:$0xff]  ;;  %847 = vmatprep.subr.bf16.mxu0 %v846_v26  ;;  %v880_v38 = vpack.c.bf16 %v102_v32, %v101_v31  ;;  %v850_v39 = vpack.c.bf16 %v88_v36, %v87_v35  ;;  %v72_v40 = vld [vmem:[#allocation5 + $0x38] sm:$0xff]  ;;  %v89_v46 = vld [vmem:[#allocation5 + $0xc0] sm:$0xff] }
  0x40   :  { %877 = vmatpush3.bf16.msra.mxu1 %v876_v25  ;;  %v119_v41 = vld [vmem:[#allocation5 + $0x1b0] sm:$0xff]  ;;  %v120_v42 = vld [vmem:[#allocation5 + $0x1b8] sm:$0xff]  ;;  %v90_v50 = vld [vmem:[#allocation5 + $0xc8] sm:$0xff]  ;;  %v852_v51 = vpack.c.bf16 %v72_v40, %v71_v37 }
  0x41   :  { %879 = vmatprep.subr.bf16.mxu1 %v878_v34  ;;  %v882_v43 = vpack.c.bf16 %v120_v42, %v119_v41  ;;  %v103_v44 = vld [vmem:[#allocation5 + $0x130] sm:$0xff]  ;;  %v104_v45 = vld [vmem:[#allocation5 + $0x138] sm:$0xff]  ;;  %v121_v52 = vld [vmem:[#allocation5 + $0x1c0] sm:$0xff]  ;;  %v854_v55 = vpack.c.bf16 %v90_v50, %v89_v46 }
  0x42   :  { %849 = vmatpush3.bf16.msra.mxu0 %v848_v33  ;;  %v122_v53 = vld [vmem:[#allocation5 + $0x1c8] sm:$0xff]  ;;  %v884_v54 = vpack.c.bf16 %v104_v45, %v103_v44  ;;  %v73_v56 = vld [vmem:[#allocation5 + $0x40] sm:$0xff]  ;;  %v91_v61 = vld [vmem:[#allocation5 + $0xd0] sm:$0xff] }
  0x43   :  { %851 = vmatprep.subr.bf16.mxu0 %v850_v39  ;;  %v74_v57 = vld [vmem:[#allocation5 + $0x48] sm:$0xff]  ;;  %v105_v58 = vld [vmem:[#allocation5 + $0x140] sm:$0xff]  ;;  %v886_v59 = vpack.c.bf16 %v122_v53, %v121_v52  ;;  %v92_v62 = vld [vmem:[#allocation5 + $0xd8] sm:$0xff] }
  0x44   :  { %881 = vmatpush3.bf16.msra.mxu1 %v880_v38  ;;  %v106_v60 = vld [vmem:[#allocation5 + $0x148] sm:$0xff]  ;;  %v123_v1 = vld [vmem:[#allocation5 + $0x1d0] sm:$0xff]  ;;  %v124_v2 = vld [vmem:[#allocation5 + $0x1d8] sm:$0xff]  ;;  %v856_v3 = vpack.c.bf16 %v74_v57, %v73_v56  ;;  %v858_v5 = vpack.c.bf16 %v92_v62, %v91_v61 }
  0x45   :  { %883 = vmatprep.subr.bf16.mxu1 %v882_v43  ;;  %v888_v4 = vpack.c.bf16 %v106_v60, %v105_v58  ;;  %v75_v6 = vld [vmem:[#allocation5 + $0x50] sm:$0xff]  ;;  %v76_v7 = vld [vmem:[#allocation5 + $0x58] sm:$0xff]  ;;  %v890_v9 = vpack.c.bf16 %v124_v2, %v123_v1  ;;  %v93_v11 = vld [vmem:[#allocation5 + $0xe0] sm:$0xff] }
  0x46   :  { %853 = vmatpush3.bf16.msra.mxu0 %v852_v51  ;;  %v107_v8 = vld [vmem:[#allocation5 + $0x150] sm:$0xff]  ;;  %v108_v10 = vld [vmem:[#allocation5 + $0x158] sm:$0xff]  ;;  %v94_v12 = vld [vmem:[#allocation5 + $0xe8] sm:$0xff]  ;;  %v860_v16 = vpack.c.bf16 %v76_v7, %v75_v6 }
  0x47   :  { %855 = vmatprep.subr.bf16.mxu0 %v854_v55  ;;  %v125_v14 = vld [vmem:[#allocation5 + $0x1e0] sm:$0xff]  ;;  %v126_v15 = vld [vmem:[#allocation5 + $0x1e8] sm:$0xff]  ;;  %v892_v18 = vpack.c.bf16 %v108_v10, %v107_v8  ;;  %v862_v19 = vpack.c.bf16 %v94_v12, %v93_v11  ;;  %v63_v22 = vld [vmem:[#allocation2] sm:$0xff] }
  0x48   :  { %885 = vmatpush3.bf16.msra.mxu1 %v884_v54  ;;  %v77_v17 = vld [vmem:[#allocation5 + $0x60] sm:$0xff]  ;;  %v78_v20 = vld [vmem:[#allocation5 + $0x68] sm:$0xff]  ;;  %v894_v23 = vpack.c.bf16 %v126_v15, %v125_v14  ;;  %v95_v25 = vld [vmem:[#allocation5 + $0xf0] sm:$0xff]  ;;  %v209_v27 = vrot.slane %v63_v22, %v1183_v13  ;;  %v202_v28 = vcombine.high %v63_v22, %v63_v22 }
  0x49   :  { %887 = vmatprep.subr.bf16.mxu1 %v886_v59  ;;  %v109_v21 = vld [vmem:[#allocation5 + $0x160] sm:$0xff]  ;;  %v110_v24 = vld [vmem:[#allocation5 + $0x168] sm:$0xff]  ;;  %v96_v26 = vld [vmem:[#allocation5 + $0xf8] sm:$0xff]  ;;  %v864_v31 = vpack.c.bf16 %v78_v20, %v77_v17 }
  0x4a   :  { %857 = vmatpush3.bf16.msra.mxu0 %v856_v3  ;;  %v127_v29 = vld [vmem:[#allocation5 + $0x1f0] sm:$0xff]  ;;  %v128_v30 = vld [vmem:[#allocation5 + $0x1f8] sm:$0xff]  ;;  %v217_v32 = vcombine.high %v209_v27, %v209_v27  ;;  %v216_v33 = vrot.slane %v202_v28, %v1183_v13  ;;  %v896_v34 = vpack.c.bf16 %v110_v24, %v109_v21  ;;  %v866_v35 = vpack.c.bf16 %v96_v26, %v95_v25  ;;  %v145_v41 = vld [vmem:[#allocation5 + $0x280] sm:$0xff] }
  0x4b   :  { %859 = vmatprep.subr.bf16.mxu0 %v858_v5  ;;  %v79_v36 = vld [vmem:[#allocation5 + $0x70] sm:$0xff]  ;;  %v80_v37 = vld [vmem:[#allocation5 + $0x78] sm:$0xff]  ;;  %v898_v39 = vpack.c.bf16 %v128_v30, %v127_v29  ;;  %v146_v42 = vld [vmem:[#allocation5 + $0x288] sm:$0xff] }
  0x4c   :  { %889 = vmatpush3.bf16.msra.mxu1 %v888_v4  ;;  %v111_v38 = vld [vmem:[#allocation5 + $0x170] sm:$0xff]  ;;  %v112_v40 = vld [vmem:[#allocation5 + $0x178] sm:$0xff]  ;;  %308 = vmatprep.mubr.f32.mxu0 %v217_v32  ;;  %v218_v43 = vcombine.high %v216_v33, %v216_v33  ;;  %v177_v44 = vld [vmem:[#allocation5 + $0x380] sm:$0xff]  ;;  %v868_v46 = vpack.c.bf16 %v80_v37, %v79_v36  ;;  %v902_v48 = vpack.c.bf16 %v146_v42, %v145_v41 }
  0x4d   :  { %891 = vmatprep.subr.bf16.mxu1 %v890_v9  ;;  %v178_v45 = vld [vmem:[#allocation5 + $0x388] sm:$0xff]  ;;  %v900_v47 = vpack.c.bf16 %v112_v40, %v111_v38  ;;  %v129_v49 = vld [vmem:[#allocation5 + $0x200] sm:$0xff]  ;;  %v147_v54 = vld [vmem:[#allocation5 + $0x290] sm:$0xff] }
  0x4e   :  { %861 = vmatpush3.bf16.msra.mxu0 %v860_v16  ;;  %378 = vmatprep.mubr.f32.mxu1 %v218_v43  ;;  %v130_v50 = vld [vmem:[#allocation5 + $0x208] sm:$0xff]  ;;  %v161_v51 = vld [vmem:[#allocation5 + $0x300] sm:$0xff]  ;;  %v934_v52 = vpack.c.bf16 %v178_v45, %v177_v44  ;;  %v148_v55 = vld [vmem:[#allocation5 + $0x298] sm:$0xff] }
  0x4f   :  { %863 = vmatprep.subr.bf16.mxu0 %v862_v19  ;;  %v162_v53 = vld [vmem:[#allocation5 + $0x308] sm:$0xff]  ;;  %v179_v56 = vld [vmem:[#allocation5 + $0x390] sm:$0xff]  ;;  %v180_v57 = vld [vmem:[#allocation5 + $0x398] sm:$0xff]  ;;  %v904_v58 = vpack.c.bf16 %v130_v50, %v129_v49  ;;  %v906_v60 = vpack.c.bf16 %v148_v55, %v147_v54 }
  0x50   :  { %893 = vmatpush3.bf16.msra.mxu1 %v892_v18  ;;  %v936_v59 = vpack.c.bf16 %v162_v53, %v161_v51  ;;  %v131_v61 = vld [vmem:[#allocation5 + $0x210] sm:$0xff]  ;;  %v132_v62 = vld [vmem:[#allocation5 + $0x218] sm:$0xff]  ;;  %v938_v0 = vpack.c.bf16 %v180_v57, %v179_v56  ;;  %v149_v2 = vld [vmem:[#allocation5 + $0x2a0] sm:$0xff] }
  0x51   :  { %895 = vmatprep.subr.bf16.mxu1 %v894_v23  ;;  %v163_v63 = vld [vmem:[#allocation5 + $0x310] sm:$0xff]  ;;  %v164_v1 = vld [vmem:[#allocation5 + $0x318] sm:$0xff]  ;;  %v150_v3 = vld [vmem:[#allocation5 + $0x2a8] sm:$0xff]  ;;  %v908_v6 = vpack.c.bf16 %v132_v62, %v131_v61 }
  0x52   :  { %865 = vmatpush3.bf16.msra.mxu0 %v864_v31  ;;  %v181_v4 = vld [vmem:[#allocation5 + $0x3a0] sm:$0xff]  ;;  %v182_v5 = vld [vmem:[#allocation5 + $0x3a8] sm:$0xff]  ;;  %v940_v7 = vpack.c.bf16 %v164_v1, %v163_v63  ;;  %v910_v8 = vpack.c.bf16 %v150_v3, %v149_v2  ;;  %v151_v15 = vld [vmem:[#allocation5 + $0x2b0] sm:$0xff] }
  0x53   :  { %867 = vmatprep.subr.bf16.mxu0 %v866_v35  ;;  %v133_v9 = vld [vmem:[#allocation5 + $0x220] sm:$0xff]  ;;  %v134_v10 = vld [vmem:[#allocation5 + $0x228] sm:$0xff]  ;;  %v942_v12 = vpack.c.bf16 %v182_v5, %v181_v4  ;;  %v152_v16 = vld [vmem:[#allocation5 + $0x2b8] sm:$0xff] }
  0x54   :  { %897 = vmatpush3.bf16.msra.mxu1 %v896_v34  ;;  %v165_v11 = vld [vmem:[#allocation5 + $0x320] sm:$0xff]  ;;  %v166_v14 = vld [vmem:[#allocation5 + $0x328] sm:$0xff]  ;;  %v183_v17 = vld [vmem:[#allocation5 + $0x3b0] sm:$0xff]  ;;  %v912_v19 = vpack.c.bf16 %v134_v10, %v133_v9  ;;  %v914_v21 = vpack.c.bf16 %v152_v16, %v151_v15 }
  0x55   :  { %899 = vmatprep.subr.bf16.mxu1 %v898_v39  ;;  %v184_v18 = vld [vmem:[#allocation5 + $0x3b8] sm:$0xff]  ;;  %v944_v20 = vpack.c.bf16 %v166_v14, %v165_v11  ;;  %v135_v22 = vld [vmem:[#allocation5 + $0x230] sm:$0xff]  ;;  %v154_v28 = vld [vmem:[#allocation5 + $0x2c8] sm:$0xff] }
  0x56   :  { %869 = vmatpush3.bf16.msra.mxu0 %v868_v46  ;;  %v136_v23 = vld [vmem:[#allocation5 + $0x238] sm:$0xff]  ;;  %v167_v24 = vld [vmem:[#allocation5 + $0x330] sm:$0xff]  ;;  %v946_v25 = vpack.c.bf16 %v184_v18, %v183_v17  ;;  %v185_v29 = vld [vmem:[#allocation5 + $0x3c0] sm:$0xff] }
  0x57   :  { %903 = vmatprep.subr.bf16.mxu0 %v902_v48  ;;  %v168_v26 = vld [vmem:[#allocation5 + $0x338] sm:$0xff]  ;;  %v186_v30 = vld [vmem:[#allocation5 + $0x3c8] sm:$0xff]  ;;  %v916_v32 = vpack.c.bf16 %v136_v23, %v135_v22  ;;  %v137_v37 = vld [vmem:[#allocation5 + $0x240] sm:$0xff]  ;;  %v1102_v22 = vmov 0.0|0.0  }
  0x58   :  { %901 = vmatpush3.bf16.msra.mxu1 %v900_v47  ;;  %v64_v31 = vld [vmem:[#allocation2 + $0x8] sm:$0xff]  ;;  %v948_v35 = vpack.c.bf16 %v168_v26, %v167_v24  ;;  %v138_v38 = vld [vmem:[#allocation5 + $0x248] sm:$0xff]  ;;  %v169_v39 = vld [vmem:[#allocation5 + $0x340] sm:$0xff]  ;;  %v950_v40 = vpack.c.bf16 %v186_v30, %v185_v29 }
  0x59   :  { %935 = vmatprep.subr.bf16.mxu1 %v934_v52  ;;  %309 = vmatmul.mubr.f32.vlgmr.msra.gmra.mrb[0].mxu0 %v209_v27  ;;  %v153_v27 = vld [vmem:[#allocation5 + $0x2c0] sm:$0xff]  ;;  %v219_v34 = vcombine.high %v64_v31, %v64_v31  ;;  %v170_v41 = vld [vmem:[#allocation5 + $0x348] sm:$0xff]  ;;  %v155_v42 = vld [vmem:[#allocation5 + $0x2d0] sm:$0xff]  ;;  %v920_v48 = vpack.c.bf16 %v138_v38, %v137_v37 }
  0x5a   :  { %905 = vmatpush3.bf16.msra.mxu0 %v904_v58  ;;  %v918_v36 = vpack.c.bf16 %v154_v28, %v153_v27  ;;  %v156_v43 = vld [vmem:[#allocation5 + $0x2d8] sm:$0xff]  ;;  %v187_v46 = vld [vmem:[#allocation5 + $0x3d0] sm:$0xff]  ;;  %v952_v50 = vpack.c.bf16 %v170_v41, %v169_v39  ;;  %v157_v57 = vld [vmem:[#allocation5 + $0x2e0] sm:$0xff] }
  0x5b   :  { %379 = vmatmul.mubr.f32.vlgmr.msra.gmra.mrb[0].mxu1 %v216_v33  ;;  %907 = vmatprep.subr.bf16.mxu0 %v906_v60  ;;  %v1188_v33 = vrot.slane %v64_v31, %v1183_v13  ;;  %v233_v45 = vrot.slane %v219_v34, %v1183_v13  ;;  %v188_v47 = vld [vmem:[#allocation5 + $0x3d8] sm:$0xff]  ;;  %v922_v51 = vpack.c.bf16 %v156_v43, %v155_v42  ;;  %v139_v52 = vld [vmem:[#allocation5 + $0x250] sm:$0xff]  ;;  %v158_v58 = vld [vmem:[#allocation5 + $0x2e8] sm:$0xff] }
  0x5c   :  { %937 = vmatpush3.bf16.msra.mxu1 %v936_v59  ;;  %v140_v53 = vld [vmem:[#allocation5 + $0x258] sm:$0xff]  ;;  %v171_v54 = vld [vmem:[#allocation5 + $0x350] sm:$0xff]  ;;  %v954_v55 = vpack.c.bf16 %v188_v47, %v187_v46  ;;  %v189_v13 = vld [vmem:[#allocation5 + $0x3e0] sm:$0xff]  ;;  %v926_v62 = vpack.c.bf16 %v158_v58, %v157_v57 }
  0x5d   :  { %939 = vmatprep.subr.bf16.mxu1 %v938_v0  ;;  %v234_v44 = vcombine.high %v1188_v33, %v1188_v33  ;;  %v235_v49 = vcombine.high %v233_v45, %v233_v45  ;;  %v172_v56 = vld [vmem:[#allocation5 + $0x358] sm:$0xff]  ;;  %v190_v59 = vld [vmem:[#allocation5 + $0x3e8] sm:$0xff]  ;;  %v924_v60 = vpack.c.bf16 %v140_v53, %v139_v52  ;;  %v141_v63 = vld [vmem:[#allocation5 + $0x260] sm:$0xff] }
  0x5e   :  { %909 = vmatpush3.bf16.msra.mxu0 %v908_v6  ;;  %v956_v61 = vpack.c.bf16 %v172_v56, %v171_v54  ;;  %v142_v0 = vld [vmem:[#allocation5 + $0x268] sm:$0xff]  ;;  %v173_v1 = vld [vmem:[#allocation5 + $0x360] sm:$0xff]  ;;  %v958_v2 = vpack.c.bf16 %v190_v59, %v189_v13  ;;  %v159_v4 = vld [vmem:[#allocation5 + $0x2f0] sm:$0xff] }
  0x5f   :  { %911 = vmatprep.subr.bf16.mxu0 %v910_v8  ;;  %448 = vmatprep.mubr.f32.mxu0 %v234_v44  ;;  %v174_v3 = vld [vmem:[#allocation5 + $0x368] sm:$0xff]  ;;  %v160_v5 = vld [vmem:[#allocation5 + $0x2f8] sm:$0xff]  ;;  %v191_v6 = vld [vmem:[#allocation5 + $0x3f0] sm:$0xff]  ;;  %v928_v8 = vpack.c.bf16 %v142_v0, %v141_v63  ;;  %v1104_v44 = vmov 0.0  }
  0x60   :  { %941 = vmatpush3.bf16.msra.mxu1 %v940_v7  ;;  %518 = vmatprep.mubr.f32.mxu1 %v235_v49  ;;  %v192_v7 = vld [vmem:[#allocation5 + $0x3f8] sm:$0xff]  ;;  %v960_v9 = vpack.c.bf16 %v174_v3, %v173_v1  ;;  %v930_v10 = vpack.c.bf16 %v160_v5, %v159_v4  ;;  %v143_v11 = vld [vmem:[#allocation5 + $0x270] sm:$0xff]  ;;  %v537_v26 = vld [vmem:[#allocation7 + $0x20] sm:$0xff] }
  0x61   :  { %943 = vmatprep.subr.bf16.mxu1 %v942_v12  ;;  %v144_v12 = vld [vmem:[#allocation5 + $0x278] sm:$0xff]  ;;  %v962_v14 = vpack.c.bf16 %v192_v7, %v191_v6  ;;  %v175_v15 = vld [vmem:[#allocation5 + $0x370] sm:$0xff]  ;;  %v538_v27 = vld [vmem:[#allocation7 + $0x28] sm:$0xff] }
  0x62   :  { %913 = vmatpush3.bf16.msra.mxu0 %v912_v19  ;;  %v176_v16 = vld [vmem:[#allocation5 + $0x378] sm:$0xff]  ;;  %v932_v17 = vpack.c.bf16 %v144_v12, %v143_v11  ;;  %v533_v19 = vld [vmem:[#allocation7] sm:$0xff]  ;;  %v973_v28 = vpack.c.bf16 %v538_v27, %v537_v26  ;;  %v539_v29 = vld [vmem:[#allocation7 + $0x30] sm:$0xff] }
  0x63   :  { %915 = vmatprep.subr.bf16.mxu0 %v914_v21  ;;  %v964_v18 = vpack.c.bf16 %v176_v16, %v175_v15  ;;  %v535_v21 = vld [vmem:[#allocation7 + $0x10] sm:$0xff]  ;;  %v536_v24 = vld [vmem:[#allocation7 + $0x18] sm:$0xff]  ;;  %v545_v38 = vld [vmem:[#allocation7 + $0x60] sm:$0xff] }
  0x64   :  { %945 = vmatpush3.bf16.msra.mxu1 %v944_v20  ;;  %v534_v20 = vld [vmem:[#allocation7 + $0x8] sm:$0xff]  ;;  %v540_v30 = vld [vmem:[#allocation7 + $0x38] sm:$0xff]  ;;  %v547_v41 = vld [vmem:[#allocation7 + $0x70] sm:$0xff] }
  0x65   :  { %947 = vmatprep.subr.bf16.mxu1 %v946_v25  ;;  %v967_v23 = vpack.c.bf16 %v534_v20, %v533_v19  ;;  %v970_v25 = vpack.c.bf16 %v536_v24, %v535_v21  ;;  %v976_v31 = vpack.c.bf16 %v540_v30, %v539_v29  ;;  %v546_v39 = vld [vmem:[#allocation7 + $0x68] sm:$0xff]  ;;  %v548_v42 = vld [vmem:[#allocation7 + $0x78] sm:$0xff]  ;;  %v643_v46 = vld [vmem:[%s1217_s2] ss:$0 sm:$0xff] }
  0x66   :  { %917 = vmatpush3.bf16.msra.mxu0 %v916_v32  ;;  %v541_v32 = vld [vmem:[#allocation7 + $0x40] sm:$0xff]  ;;  %v988_v43 = vpack.c.bf16 %v548_v42, %v547_v41  ;;  %v645_v0 = vld [vmem:[%s1220_s5] ss:$0 sm:$0xff] }
  0x67   :  { %919 = vmatprep.subr.bf16.mxu0 %v918_v36  ;;  %v544_v36 = vld [vmem:[#allocation7 + $0x58] sm:$0xff] }
  0x68   :  { %949 = vmatpush3.bf16.msra.mxu1 %v948_v35  ;;  %v543_v35 = vld [vmem:[#allocation7 + $0x50] sm:$0xff] }
  0x69   :  { %951 = vmatprep.subr.bf16.mxu1 %v950_v40  ;;  %v982_v37 = vpack.c.bf16 %v544_v36, %v543_v35  ;;  %v985_v40 = vpack.c.bf16 %v546_v39, %v545_v38 }
  0x6a   :  { %921 = vmatpush3.bf16.msra.mxu0 %v920_v48 }
  0x6b   :  { %923 = vmatprep.subr.bf16.mxu0 %v922_v51 }
  0x6c   :  { %953 = vmatpush3.bf16.msra.mxu1 %v952_v50 }
  0x6d   :  { %955 = vmatprep.subr.bf16.mxu1 %v954_v55 }
  0x6e   :  { %925 = vmatpush3.bf16.msra.mxu0 %v924_v60 }
  0x6f   :  { %927 = vmatprep.subr.bf16.mxu0 %v926_v62 }
  0x70   :  { %957 = vmatpush3.bf16.msra.mxu1 %v956_v61  ;;  %v644_v61 = vld [vmem:[%s1218_s3] ss:$0 sm:$0xff] }
  0x71   :  { %959 = vmatprep.subr.bf16.mxu1 %v958_v2 }
  0x72   :  { %929 = vmatpush3.bf16.msra.mxu0 %v928_v8 }
  0x73   :  { %931 = vmatprep.subr.bf16.mxu0 %v930_v10 }
  0x74   :  { %961 = vmatpush3.bf16.msra.mxu1 %v960_v9 }
  0x75   :  { %963 = vmatprep.subr.bf16.mxu1 %v962_v14 }
  0x76   :  { %933 = vmatpush3.bf16.msra.mxu0 %v932_v17 }
  0x77   :  { %966 = vmatprep.subr.bf16.mxu0 %v1102_v22 }
  0x78   :  { %965 = vmatpush3.bf16.msra.mxu1 %v964_v18 }
  0x79   :  { %449 = vmatmul.mubr.f32.vlgmr.msra.gmra.mrb[2].mxu0 %v1188_v33  ;;  %v542_v33 = vld [vmem:[#allocation7 + $0x48] sm:$0xff] }
  0x7a   :  { %968 = vmatpush3.bf16.msra.mxu0 %v967_v23  ;;  %v979_v34 = vpack.c.bf16 %v542_v33, %v541_v32  ;;  %835 = vmatprep.mubr.msk.f32.mxu0 %vm1103_vm0, %v1104_v44 }
  0x7b   :  { %519 = vmatmul.mubr.f32.vlgmr.msra.gmra.mrb[2].mxu1 %v233_v45  ;;  %969 = vmatprep.subr.bf16.mxu0 %v1102_v22 }
  0x7e   :  { %971 = vmatpush3.bf16.msra.mxu0 %v970_v25 }
  0x7f   :  { %972 = vmatprep.subr.bf16.mxu0 %v1102_v22 }
  0x82   :  { %974 = vmatpush3.bf16.msra.mxu0 %v973_v28 }
  0x83   :  { %975 = vmatprep.subr.bf16.mxu0 %v1102_v22 }
  0x86   :  { %977 = vmatpush3.bf16.msra.mxu0 %v976_v31 }
  0x87   :  { %978 = vmatprep.subr.bf16.mxu0 %v1102_v22 }
  0x8a   :  { %980 = vmatpush3.bf16.msra.mxu0 %v979_v34 }
  0x8b   :  { %981 = vmatprep.subr.bf16.mxu0 %v1102_v22 }
  0x8e   :  { %983 = vmatpush3.bf16.msra.mxu0 %v982_v37 }
  0x8f   :  { %984 = vmatprep.subr.bf16.mxu0 %v1102_v22 }
  0x92   :  { %986 = vmatpush3.bf16.msra.mxu0 %v985_v40 }
  0x93   :  { %987 = vmatprep.subr.bf16.mxu0 %v1102_v22 }
  0x96   :  { %989 = vmatpush3.bf16.msra.mxu0 %v988_v43 }
 0x12c   :  { %v678_v45 = vpop.f32.mrb[0].mxu0 }
 0x12d   :  { %v679_v47 = vpop.f32.mrb[1].mxu0 }
 0x12e   :  { %v713_v48 = vpop.f32.mrb[0].mxu1  ;;  %v680_v49 = vadd.f32 %v679_v47, %v678_v45 }
 0x12f   :  { %v714_v50 = vpop.f32.mrb[1].mxu1 }
 0x130   :  { %v715_v51 = vadd.f32 %v714_v50, %v713_v48  ;;  %v311_v52 = vadd.f32 %v680_v49, %v643_v46 }
 0x132   :  { %v381_v53 = vadd.f32 %v715_v51, %v311_v52 }
 0x14c   :  { %v748_v54 = vpop.f32.mrb[2].mxu0 }
 0x14d   :  { %v749_v55 = vpop.f32.mrb[3].mxu0 }
 0x14e   :  { %v783_v56 = vpop.f32.mrb[2].mxu1  ;;  %v750_v57 = vadd.f32 %v749_v55, %v748_v54 }
 0x14f   :  { %v784_v58 = vpop.f32.mrb[3].mxu1 }
 0x150   :  { %v785_v13 = vadd.f32 %v784_v58, %v783_v56  ;;  %v451_v59 = vadd.f32 %v750_v57, %v381_v53 }
 0x152   :  { %v521_v60 = vadd.f32 %v785_v13, %v451_v59 }
 0x154   :  { %v524_v62 = vmax.f32 %v521_v60, 0.0 }
 0x156   :  { %v532_v63 = vmul.f32 %v644_v61, %v524_v62 }
 0x158   :  { %836 = vmatmul.mubr.f32.vlgmr.msra.gmra.mrb[4].mxu0 %v532_v63 }
 0x22b   :  { %v622_v1 = vpop.f32.mrb[4].mxu0 }
 0x22c   :  { %v623_v2 = vadd.f32 %v645_v0, %v622_v1  ;;  %v837_v3 = vpop.f32.mrb[5].mxu0 }
 0x22e   :  { %626 = vst [vmem:[#allocation8] sm:$0x3] %v623_v2 }
 0x22f   :  { %1079 = shalt.err (!%p1076_p0)
}
 0x230   :  { %s1080_s17 = scalar_lea.hbm %s1221_s6, 32 }
 0x231   :  { %p1081_p1 = scmp.ne.s32.totalorder %s1221_s6, %s1080_s17  ;;  %p1084_p2 = scmp.lt.u32.totalorder %s1080_s17, %s1221_s6 }
 0x233   :  { %p1086_p3 = pnand %p1084_p2, %p1081_p1 }
 0x235   :  { %1089 = shalt.err (!%p1086_p3)
}
 0x236   :  { %636 = dma.vmem_to_hbm [thread:$0]  %s634_s14, 32, %s1221_s6, [#allocation4]  }
 0x237   :  { %1094 = dma.done.wait [#allocation4], 32  }
 0x238   :  { %1095 = vsyncadd [#allocation4], 4294967264 }
 0x239   :  { %640 = vsyncpa [#allocation3], 1 }
 0x23a   :  { %641 = vsyncpa [#allocation6], 1 }
 0x23b   :  { %642 = vsyncpa [#allocation4], 1 }

</bundles_post_ra>
